<compile_context>
chip_gen: v7x
topology: tpu7x:2x2x1
jax: 0.10.0
libtpu: 0.0.40
codegen_flags: <defaults>
</compile_context>

<pallas_src>
import jax
import jax.numpy as jnp
from jax.experimental import pallas as pl
from jax.experimental.pallas import tpu as pltpu

_LANE = 128       # vreg lane width
_ROW_PACK = 32    # worst-case sublane packing (int8/fp8: 32 rows per vreg)


def _copy_kernel(x_ref, o_ref):
    # Reshape has zero arithmetic; the kernel is a lane-dense identity copy of
    # one (block_b, block_f) tile of the flattened (B, F) tensor.
    o_ref[...] = x_ref[...]


def _round_down(x: int, m: int) -> int:
    return (x // m) * m


def _round_up(x: int, m: int) -> int:
    return ((x + m - 1) // m) * m


def _choose_blocks(b: int, f: int, itemsize: int, target_bytes: int):
    """Pick a (block_b, block_f) tile for the (B, F) copy.

    Compliance (Mosaic (8,128)-tiling, dtype-agnostic):
      * block_f is a multiple of 128, or equal to F   (lane-dense, unmasked vst)
      * block_b is a multiple of 32, or equal to B    (sublane-packed for all dtypes)
    Targets:
      * ~target_bytes per block (amortizes the ~0.35 us per-grid-step overhead)
      * grid >= 2 for large tensors so "parallel" axes split across v7x's 2 TCs.
    """
    # Minor (lane) dim first: as wide as the budget allows at the minimal row pack.
    row_pack = b if b < _ROW_PACK else _ROW_PACK
    if f <= _LANE:
        block_f = f                                   # full minor dim (compliant)
    else:
        budget_f = _round_down(max(target_bytes // (row_pack * itemsize), _LANE), _LANE)
        block_f = f if budget_f >= f else budget_f    # full F, or 128-aligned chunk

    # Sublane (row) dim: fill the remaining byte budget.
    row_budget = max(1, target_bytes // (block_f * itemsize))
    if b <= max(_ROW_PACK, row_budget):
        block_b = b                                   # full batch dim (compliant)
    else:
        block_b = max(_ROW_PACK, _round_down(row_budget, _ROW_PACK))

    # v7x: a "large" single-block copy should still yield >= 2 grid steps so
    # both TensorCores issue DMAs (the grid axes are marked "parallel").
    n_blocks = pl.cdiv(b, block_b) * pl.cdiv(f, block_f)
    if n_blocks == 1 and block_b * block_f * itemsize >= (1 << 20) and f >= 2 * _LANE:
        block_f = max(_LANE, _round_up(pl.cdiv(f, 2), _LANE))

    return block_b, block_f


def reshape_forward(x, *, target_block_bytes: int = 4 * 1024 * 1024):
    """Pallas equivalent of torch `x.view(x.size(0), -1)`."""
    b = x.shape[0]
    f = 1
    for d in x.shape[1:]:
        f *= d

    # Single piece of layout glue: row-major flatten of the trailing dims
    # (identical to torch .view on a contiguous tensor).  No pad, no repack,
    # no post-kernel reshapes; the pallas_call output below IS the result.
    x2d = x if x.ndim == 2 else jnp.reshape(x, (b, f))

    itemsize = jnp.dtype(x.dtype).itemsize
    block_b, block_f = _choose_blocks(b, f, itemsize, target_block_bytes)
    grid = (pl.cdiv(b, block_b), pl.cdiv(f, block_f))

    block_bytes = block_b * block_f * itemsize
    # in + out, double-buffered, plus headroom; stays below v7x's 64 MiB VMEM.
    vmem_limit = min(48 * 1024 * 1024, max(32 * 1024 * 1024, 4 * block_bytes + (4 << 20)))

    return pl.pallas_call(
        _copy_kernel,
        out_shape=jax.ShapeDtypeStruct((b, f), x.dtype),
        grid_spec=pltpu.PrefetchScalarGridSpec(
            num_scalar_prefetch=0,
            grid=grid,
            in_specs=[pl.BlockSpec((block_b, block_f), lambda i, j: (i, j))],
            out_specs=pl.BlockSpec((block_b, block_f), lambda i, j: (i, j)),
        ),
        compiler_params=pltpu.CompilerParams(
            dimension_semantics=("parallel", "parallel"),
            vmem_limit_bytes=vmem_limit,
        ),
        cost_estimate=pl.CostEstimate(
            flops=0,
            transcendentals=0,
            bytes_accessed=2 * b * f * itemsize,
        ),
    )(x2d)


if __name__ == "__main__":
    key = jax.random.PRNGKey(0)
    k1, k2, k3, k4 = jax.random.split(key, 4)

    # Primary test: NCHW feature map, B=2, C=4, H=W=16.
    x = jax.random.normal(k1, (2, 4, 16, 16), dtype=jnp.float32)
    y = jax.block_until_ready(reshape_forward(x))
    assert y.shape == (2, 4 * 16 * 16), y.shape
    assert y.dtype == x.dtype
    assert bool(jnp.array_equal(y, jnp.reshape(x, (2, -1)))), "mismatch (NCHW)"

    # Ragged trailing dims (F < 128 -> full-dim block, boundary-safe).
    x2 = jax.random.normal(k2, (3, 5, 7), dtype=jnp.float32)
    y2 = jax.block_until_ready(reshape_forward(x2))
    assert bool(jnp.array_equal(y2, jnp.reshape(x2, (3, -1)))), "mismatch (ragged)"

    # Already-2D input: no wrapper relayout at all, kernel copy only.
    x3 = jax.random.normal(k3, (8, 1024), dtype=jnp.float32)
    y3 = jax.block_until_ready(reshape_forward(x3))
    assert bool(jnp.array_equal(y3, x3)), "mismatch (2D passthrough)"

    # Multi-block path with a ragged 128-aligned tail, bf16 (32-row packing),
    # forced small block budget to exercise chunking + boundary masking.
    x4 = jax.random.normal(k4, (16, 4, 40, 33), dtype=jnp.bfloat16)
    y4 = jax.block_until_ready(reshape_forward(x4, target_block_bytes=64 * 1024))
    assert bool(jnp.array_equal(y4, jnp.reshape(x4, (16, -1)))), "mismatch (bf16 chunked)"

    print("KERNEL_OK")
</pallas_src>

<mosaic_0001>
module attributes {stable_mosaic.version = 11 : i64} {
  func.func @_copy_kernel(%arg0: i32, %arg1: i32, %arg2: memref<2x1024xf32, #tpu.memory_space<vmem>>, %arg3: memref<2x1024xf32, #tpu.memory_space<vmem>>) attributes {dimension_semantics = [#tpu.dimension_semantics<parallel>, #tpu.dimension_semantics<parallel>], iteration_bounds = array<i64: 1, 1>, scalar_prefetch = 0 : i64, scratch_operands = 0 : i64, tpu.core_type = #tpu.core_type<tc>, window_params = [{transform_indices = @transform_0, window_bounds = array<i64: 2, 1024>}, {transform_indices = @transform_1, window_bounds = array<i64: 2, 1024>}]} {
    %c0 = arith.constant 0 : index
    %c0_0 = arith.constant 0 : index
    %0 = vector.load %arg2[%c0, %c0_0] : memref<2x1024xf32, #tpu.memory_space<vmem>>, vector<2x1024xf32>
    %c0_1 = arith.constant 0 : index
    %c0_2 = arith.constant 0 : index
    %1 = vector.load %arg3[%c0_1, %c0_2] : memref<2x1024xf32, #tpu.memory_space<vmem>>, vector<2x1024xf32>
    tpu.vector_store %arg3[%c0_1, %c0_2], %0 {strides = array<i32>} : memref<2x1024xf32, #tpu.memory_space<vmem>>, vector<2x1024xf32>,
    return
  }
  func.func @transform_0(%arg0: i32, %arg1: i32) -> (i32, i32) {
    %c0_i32 = arith.constant 0 : i32
    return %arg0, %arg1 : i32, i32
  }
  func.func @transform_1(%arg0: i32, %arg1: i32) -> (i32, i32) {
    %c0_i32 = arith.constant 0 : i32
    return %arg0, %arg1 : i32, i32
  }
}

</mosaic_0001>

<bundles_post_ra>
// kernel: tpu_custom_call.1
= control target key start
LH: loop header
LB: loop body
LE: loop exit
PB: predicated region body
PF: predicated region fallthrough
CT: control target
= control target key end

     0   :  { %6 = vsyncpa [#allocation3], 0  ;;  %s126_s0 = inlined_call_operand.hbm [shape: f32[2,1024], index: 0, kind: input, shape index: {}]   ;;  %s127_s1 = inlined_call_operand.hbm [shape: f32[2,1024], index: 1, kind: output, shape index: {}]  }
   0x1   :  { %7 = vsyncpa [#allocation4], 0  ;;  %s90_s6 = smov [#allocation2]   ;;  %s42_s10 = scalar_lea.hbm %s126_s0, 256 }
   0x2   :  { %s14_s7 = sshll.u32 %s90_s6, 4  ;;  %p43_p0 = scmp.ne.s32.totalorder %s126_s0, %s42_s10  ;;  %s15_s7 = int_to_ptr.vmem [resolvable:$true] %s14_s7 }
   0x3   :  { %p46_p1 = scmp.lt.u32.totalorder %s42_s10, %s126_s0 }
   0x5   :  { %p48_p2 = pnand %p46_p1, %p43_p0 }
   0x7   :  { %51 = shalt.err (!%p48_p2)
}
   0x8   :  { %s52_s15 = scalar_lea.vmem %s15_s7, 256  ;;  %p57_p4 = scmp.lt.s32.totalorder %s15_s7, %s15_s7 }
   0x9   :  { %p53_p3 = scmp.ne.s32.totalorder %s15_s7, %s52_s15  ;;  %p58_p5 = scmp.lt.s32.totalorder %s52_s15, %s52_s15 }
   0xb   :  { %p59_p6 = por %p58_p5, %p57_p4 }
   0xd   :  { %p60_p7 = pnand %p59_p6, %p53_p3 }
   0xf   :  { %63 = shalt.err (!%p60_p7)
}
  0x10   :  { %17 = dma.hbm_to_vmem [thread:$0]  %s126_s0, 256, %s15_s7, [#allocation3]  }
  0x11   :  { %86 = dma.done.wait [#allocation3], 256  }
  0x12   :  { %87 = vsyncadd [#allocation3], 4294967040  ;;  %s91_s18 = smov [#allocation5]   ;;  %v21_v0 = vld [vmem:[#allocation2] sm:$0xff]  ;;  %v22_v1 = vld [vmem:[#allocation2 + $0x8] sm:$0xff] }
  0x13   :  { %s31_s19 = sshll.u32 %s91_s18, 4  ;;  %23 = vst [vmem:[#allocation5] sm:$0xff] %v21_v0  ;;  %24 = vst [vmem:[#allocation5 + $0x8] sm:$0xff] %v22_v1  ;;  %s32_s19 = int_to_ptr.vmem [resolvable:$true] %s31_s19 }
  0x14   :  { %s64_s20 = scalar_lea.vmem %s32_s19, 256  ;;  %p69_p9 = scmp.lt.s32.totalorder %s32_s19, %s32_s19 }
  0x15   :  { %p65_p8 = scmp.ne.s32.totalorder %s32_s19, %s64_s20  ;;  %p70_p10 = scmp.lt.s32.totalorder %s64_s20, %s64_s20 }
  0x17   :  { %p71_p11 = por %p70_p10, %p69_p9 }
  0x19   :  { %p72_p12 = pnand %p71_p11, %p65_p8 }
  0x1b   :  { %75 = shalt.err (!%p72_p12)
}
  0x1c   :  { %s76_s0 = scalar_lea.hbm %s127_s1, 256 }
  0x1d   :  { %p77_p13 = scmp.ne.s32.totalorder %s127_s1, %s76_s0  ;;  %p80_p0 = scmp.lt.u32.totalorder %s76_s0, %s127_s1 }
  0x1f   :  { %p82_p1 = pnand %p80_p0, %p77_p13 }
  0x21   :  { %85 = shalt.err (!%p82_p1)
}
  0x22   :  { %34 = dma.vmem_to_hbm [thread:$0]  %s32_s19, 256, %s127_s1, [#allocation4]  }
  0x23   :  { %88 = dma.done.wait [#allocation4], 256  }
  0x24   :  { %89 = vsyncadd [#allocation4], 4294967040 }
  0x25   :  { %38 = vsyncpa [#allocation3], 1 }
  0x26   :  { %39 = vsyncpa [#allocation4], 1 }

</bundles_post_ra>
